<compile_context>
chip_gen: v7x
topology: tpu7x:2x2x1
jax: 0.10.0
libtpu: 0.0.40
codegen_flags: <defaults>
</compile_context>

<pallas_src>
import functools

import jax
import jax.numpy as jnp
from jax import lax
from jax.experimental import pallas as pl
from jax.experimental.pallas import tpu as pltpu


def _round_up(n, m):
    return ((n + m - 1) // m) * m


def mlp_kernel(x_ref, w1_ref, w2_ref, o_ref):
    # x:  (TILE_B, 60)      streamed per grid step
    # w1: (1000, 60)        VMEM-resident (PyTorch layout)
    # w2: (10, 1000)        VMEM-resident, lane-dense (PyTorch layout)
    x = x_ref[...]
    # h = x @ w1.T  -> contract x dim 1 with w1 dim 1 (no transposed copy materialized)
    h = lax.dot_general(
        x, w1_ref[...],
        dimension_numbers=(((1,), (1,)), ((), ())),
        preferred_element_type=jnp.float32,
    )                                   # (TILE_B, 1000)
    h = jnp.maximum(h, 0.0)             # ReLU on the VPU
    # y = h @ w2.T  -> contract h dim 1 with w2 dim 1
    y = lax.dot_general(
        h, w2_ref[...],
        dimension_numbers=(((1,), (1,)), ((), ())),
        preferred_element_type=jnp.float32,
    )                                   # (TILE_B, 10)
    o_ref[...] = y.astype(o_ref.dtype)


@functools.partial(jax.jit, static_argnames=("tile_b",))
def mlp_forward(x, w1, w2, *, tile_b=512):
    """x: (B, 60); w1: (1000, 60); w2: (10, 1000) — PyTorch nn.Linear weight layout."""
    B, K = x.shape
    N1 = w1.shape[0]   # 1000
    N2 = w2.shape[0]   # 10

    # Pick a batch tile: multiple of 8, no larger than needed, capped at `tile_b`.
    tb = min(_round_up(B, 8), _round_up(tile_b, 8))
    padded_b = _round_up(B, tb)
    if padded_b != B:
        x = jnp.pad(x, ((0, padded_b - B), (0, 0)))
    grid = (padded_b // tb,)

    cost = pl.CostEstimate(
        flops=2 * padded_b * (K * N1 + N1 * N2),
        transcendentals=0,
        bytes_accessed=(padded_b * K * 4        # x in
                        + N1 * K * 4            # w1 (loaded once, resident)
                        + N2 * N1 * 4           # w2 (loaded once, resident)
                        + padded_b * N2 * 4),   # out
    )

    out = pl.pallas_call(
        mlp_kernel,
        out_shape=jax.ShapeDtypeStruct((padded_b, N2), x.dtype),
        grid=grid,
        in_specs=[
            # x streamed per batch tile (double-buffered by the pipeline).
            pl.BlockSpec((tb, K), lambda i: (i, 0)),
            # Weights: full-array blocks, same block index every step -> stay VMEM-resident.
            pl.BlockSpec((N1, K), lambda i: (0, 0)),
            pl.BlockSpec((N2, N1), lambda i: (0, 0)),
        ],
        out_specs=pl.BlockSpec((tb, N2), lambda i: (i, 0)),
        compiler_params=pltpu.CompilerParams(
            dimension_semantics=("parallel",),
        ),
        cost_estimate=cost,
    )(x, w1, w2)

    return out[:B]


def reference_forward(x, w1, w2):
    h = jnp.maximum(x @ w1.T, 0.0)
    return h @ w2.T


if __name__ == "__main__":
    key = jax.random.PRNGKey(0)
    k_x, k_w1, k_w2 = jax.random.split(key, 3)

    B = 8
    # Deterministic parameter init (matches nn.Linear shapes: (out_features, in_features)).
    bound1 = 1.0 / (60.0 ** 0.5)
    bound2 = 1.0 / (1000.0 ** 0.5)
    w1 = jax.random.uniform(k_w1, (1000, 60), jnp.float32, -bound1, bound1)
    w2 = jax.random.uniform(k_w2, (10, 1000), jnp.float32, -bound2, bound2)
    x = jax.random.normal(k_x, (B, 60), jnp.float32)

    out = mlp_forward(x, w1, w2)
    out = jax.block_until_ready(out)

    ref = reference_forward(x, w1, w2)
    assert out.shape == (B, 10)
    assert jnp.allclose(out, ref, atol=1e-4, rtol=1e-4), "mismatch vs reference"

    # Also exercise the gridded path (B not a multiple of the tile) for coverage.
    B2 = 1000
    x2 = jax.random.normal(jax.random.PRNGKey(1), (B2, 60), jnp.float32)
    out2 = jax.block_until_ready(mlp_forward(x2, w1, w2, tile_b=256))
    ref2 = reference_forward(x2, w1, w2)
    assert out2.shape == (B2, 10)
    assert jnp.allclose(out2, ref2, atol=1e-4, rtol=1e-4), "mismatch vs reference (gridded)"

    print("KERNEL_OK")
</pallas_src>

<mosaic_0001>
module attributes {stable_mosaic.version = 11 : i64} {
  func.func @mlp_kernel(%arg0: i32, %arg1: memref<8x60xf32, #tpu.memory_space<vmem>>, %arg2: memref<1000x60xf32, #tpu.memory_space<vmem>>, %arg3: memref<10x1000xf32, #tpu.memory_space<vmem>>, %arg4: memref<8x10xf32, #tpu.memory_space<vmem>>) attributes {dimension_semantics = [#tpu.dimension_semantics<parallel>], iteration_bounds = array<i64: 1>, scalar_prefetch = 0 : i64, scratch_operands = 0 : i64, tpu.core_type = #tpu.core_type<tc>, window_params = [{transform_indices = @transform_0, window_bounds = array<i64: 8, 60>}, {pipeline_mode = #tpu.pipeline_mode<synchronous>, transform_indices = @transform_1, window_bounds = array<i64: 1000, 60>}, {pipeline_mode = #tpu.pipeline_mode<synchronous>, transform_indices = @transform_2, window_bounds = array<i64: 10, 1000>}, {transform_indices = @transform_3, window_bounds = array<i64: 8, 10>}]} {
    %c0 = arith.constant 0 : index
    %c0_0 = arith.constant 0 : index
    %0 = vector.load %arg1[%c0, %c0_0] : memref<8x60xf32, #tpu.memory_space<vmem>>, vector<8x60xf32>
    %c0_1 = arith.constant 0 : index
    %c0_2 = arith.constant 0 : index
    %1 = vector.load %arg2[%c0_1, %c0_2] : memref<1000x60xf32, #tpu.memory_space<vmem>>, vector<1000x60xf32>
    %cst = arith.constant dense<0.000000e+00> : vector<8x1000xf32>
    %2 = tpu.matmul %0, %1, %cst {dimension_numbers = #tpu.dot_dimension_numbers<[1], [1], [0], [0], [0, 0, 1, 0], [], []>} : vector<8x60xf32>, vector<1000x60xf32>, vector<8x1000xf32> -> vector<8x1000xf32>
    %cst_3 = arith.constant 0.000000e+00 : f32
    %3 = vector.broadcast %cst_3 : f32 to vector<8x1000xf32>
    %4 = arith.maximumf %2, %3 : vector<8x1000xf32>
    %c0_4 = arith.constant 0 : index
    %c0_5 = arith.constant 0 : index
    %5 = vector.load %arg3[%c0_4, %c0_5] : memref<10x1000xf32, #tpu.memory_space<vmem>>, vector<10x1000xf32>
    %cst_6 = arith.constant dense<0.000000e+00> : vector<8x10xf32>
    %6 = tpu.matmul %4, %5, %cst_6 {dimension_numbers = #tpu.dot_dimension_numbers<[1], [1], [0], [0], [0, 0, 1, 0], [], []>} : vector<8x1000xf32>, vector<10x1000xf32>, vector<8x10xf32> -> vector<8x10xf32>
    %c0_7 = arith.constant 0 : index
    %c0_8 = arith.constant 0 : index
    %7 = vector.load %arg4[%c0_7, %c0_8] : memref<8x10xf32, #tpu.memory_space<vmem>>, vector<8x10xf32>
    tpu.vector_store %arg4[%c0_7, %c0_8], %6 {strides = array<i32>} : memref<8x10xf32, #tpu.memory_space<vmem>>, vector<8x10xf32>,
    return
  }
  func.func @transform_0(%arg0: i32) -> (i32, i32) {
    %c0_i32 = arith.constant 0 : i32
    %c0_i32_0 = arith.constant 0 : i32
    return %arg0, %c0_i32 : i32, i32
  }
  func.func @transform_1(%arg0: i32) -> (i32, i32) {
    %c0_i32 = arith.constant 0 : i32
    %c0_i32_0 = arith.constant 0 : i32
    %c0_i32_1 = arith.constant 0 : i32
    return %c0_i32, %c0_i32_0 : i32, i32
  }
  func.func @transform_2(%arg0: i32) -> (i32, i32) {
    %c0_i32 = arith.constant 0 : i32
    %c0_i32_0 = arith.constant 0 : i32
    %c0_i32_1 = arith.constant 0 : i32
    return %c0_i32, %c0_i32_0 : i32, i32
  }
  func.func @transform_3(%arg0: i32) -> (i32, i32) {
    %c0_i32 = arith.constant 0 : i32
    %c0_i32_0 = arith.constant 0 : i32
    return %arg0, %c0_i32 : i32, i32
  }
}

</mosaic_0001>

<bundles_post_ra>
// kernel: mlp_forward.1
= control target key start
LH: loop header
LB: loop body
LE: loop exit
PB: predicated region body
PF: predicated region fallthrough
CT: control target
= control target key end

     0   :  { %vm141_vm0 = vcmask 490496   ;;  %s2245_s0 = inlined_call_operand.vmem [shape: f32[8,60], index: 0, kind: input, shape index: {}]   ;;  %s2246_s1 = inlined_call_operand.vmem [shape: f32[1000,60], index: 1, kind: input, shape index: {}]   ;;  %s2247_s2 = inlined_call_operand.vmem [shape: f32[10,1000], index: 2, kind: input, shape index: {}]   ;;  %s2248_s3 = inlined_call_operand.hbm [shape: f32[8,10], index: 3, kind: output, shape index: {}]  }
   0x1   :  { %v32_v0 = vld [vmem:[%s2246_s1 + $0x80] sm:$0xff]  ;;  %v33_v1 = vld [vmem:[%s2246_s1 + $0x88] sm:$0xff]  ;;  %vm1652_vm1 = vmpackc.low %vm141_vm0, %vm141_vm0 }
   0x2   :  { %v64_v2 = vld [vmem:[%s2246_s1 + $0x180] sm:$0xff]  ;;  %v1368_v3 = vpack.c.bf16 %v33_v1, %v32_v0  ;;  %v65_v5 = vld [vmem:[%s2246_s1 + $0x188] sm:$0xff]  ;;  %v34_v13 = vld [vmem:[%s2246_s1 + $0x90] sm:$0xff] }
   0x3   :  { %v16_v6 = vld [vmem:[%s2246_s1] sm:$0xff]  ;;  %v1416_v7 = vpack.c.bf16 %v65_v5, %v64_v2  ;;  %v17_v8 = vld [vmem:[%s2246_s1 + $0x8] sm:$0xff]  ;;  %v35_v14 = vld [vmem:[%s2246_s1 + $0x98] sm:$0xff] }
   0x4   :  { %v48_v9 = vld [vmem:[%s2246_s1 + $0x100] sm:$0xff]  ;;  %v49_v10 = vld [vmem:[%s2246_s1 + $0x108] sm:$0xff]  ;;  %1370 = vmatprep.subr.msk.bf16.mxu0 %vm1652_vm1, %v1368_v3  ;;  %v1371_v11 = vpack.c.bf16 %v17_v8, %v16_v6  ;;  %v66_v15 = vld [vmem:[%s2246_s1 + $0x190] sm:$0xff]  ;;  %v1374_v16 = vpack.c.bf16 %v35_v14, %v34_v13 }
   0x5   :  { %v1419_v12 = vpack.c.bf16 %v49_v10, %v48_v9  ;;  %1418 = vmatprep.subr.msk.bf16.mxu1 %vm1652_vm1, %v1416_v7  ;;  %v67_v17 = vld [vmem:[%s2246_s1 + $0x198] sm:$0xff]  ;;  %v18_v19 = vld [vmem:[%s2246_s1 + $0x10] sm:$0xff]  ;;  %v36_v23 = vld [vmem:[%s2246_s1 + $0xa0] sm:$0xff] }
   0x6   :  { %1373 = vmatpush3.bf16.xpose.msk.msra.mxu0 %vm1652_vm1, %v1371_v11  ;;  %v1422_v18 = vpack.c.bf16 %v67_v17, %v66_v15  ;;  %v19_v20 = vld [vmem:[%s2246_s1 + $0x18] sm:$0xff]  ;;  %v50_v21 = vld [vmem:[%s2246_s1 + $0x110] sm:$0xff]  ;;  %v37_v24 = vld [vmem:[%s2246_s1 + $0xa8] sm:$0xff] }
   0x7   :  { %1421 = vmatpush3.bf16.xpose.msk.msra.mxu1 %vm1652_vm1, %v1419_v12  ;;  %1376 = vmatprep.subr.msk.bf16.mxu0 %vm1652_vm1, %v1374_v16  ;;  %v51_v22 = vld [vmem:[%s2246_s1 + $0x118] sm:$0xff]  ;;  %v68_v25 = vld [vmem:[%s2246_s1 + $0x1a0] sm:$0xff]  ;;  %v69_v26 = vld [vmem:[%s2246_s1 + $0x1a8] sm:$0xff]  ;;  %v1377_v27 = vpack.c.bf16 %v19_v20, %v18_v19  ;;  %v1380_v29 = vpack.c.bf16 %v37_v24, %v36_v23 }
   0x8   :  { %1424 = vmatprep.subr.msk.bf16.mxu1 %vm1652_vm1, %v1422_v18  ;;  %v1425_v28 = vpack.c.bf16 %v51_v22, %v50_v21  ;;  %v1428_v30 = vpack.c.bf16 %v69_v26, %v68_v25  ;;  %v20_v31 = vld [vmem:[%s2246_s1 + $0x20] sm:$0xff]  ;;  %v21_v32 = vld [vmem:[%s2246_s1 + $0x28] sm:$0xff]  ;;  %v38_v35 = vld [vmem:[%s2246_s1 + $0xb0] sm:$0xff] }
   0x9   :  { %v52_v33 = vld [vmem:[%s2246_s1 + $0x120] sm:$0xff]  ;;  %v53_v34 = vld [vmem:[%s2246_s1 + $0x128] sm:$0xff]  ;;  %v39_v36 = vld [vmem:[%s2246_s1 + $0xb8] sm:$0xff]  ;;  %v1383_v39 = vpack.c.bf16 %v21_v32, %v20_v31 }
   0xa   :  { %v70_v37 = vld [vmem:[%s2246_s1 + $0x1b0] sm:$0xff]  ;;  %v71_v38 = vld [vmem:[%s2246_s1 + $0x1b8] sm:$0xff]  ;;  %v1431_v40 = vpack.c.bf16 %v53_v34, %v52_v33  ;;  %v1386_v41 = vpack.c.bf16 %v39_v36, %v38_v35  ;;  %v1764_v45 = vld [vmem:[%s2245_s0] sm:$0xff] }
   0xb   :  { %v1434_v42 = vpack.c.bf16 %v71_v38, %v70_v37  ;;  %v22_v43 = vld [vmem:[%s2246_s1 + $0x30] sm:$0xff]  ;;  %v23_v44 = vld [vmem:[%s2246_s1 + $0x38] sm:$0xff]  ;;  %v40_v48 = vld [vmem:[%s2246_s1 + $0xc0] sm:$0xff]  ;;  %1298 = vmatprep.mubr.msk.f32.mxu0 %vm141_vm0, %v1764_v45  ;;  %1332 = vmatprep.mubr.msk.f32.mxu1 %vm141_vm0, %v1764_v45 }
   0xc   :  { %v54_v46 = vld [vmem:[%s2246_s1 + $0x130] sm:$0xff]  ;;  %v55_v47 = vld [vmem:[%s2246_s1 + $0x138] sm:$0xff]  ;;  %v41_v49 = vld [vmem:[%s2246_s1 + $0xc8] sm:$0xff]  ;;  %v1389_v52 = vpack.c.bf16 %v23_v44, %v22_v43 }
   0xd   :  { %v72_v50 = vld [vmem:[%s2246_s1 + $0x1c0] sm:$0xff]  ;;  %v73_v51 = vld [vmem:[%s2246_s1 + $0x1c8] sm:$0xff]  ;;  %v1437_v53 = vpack.c.bf16 %v55_v47, %v54_v46  ;;  %v1392_v54 = vpack.c.bf16 %v41_v49, %v40_v48  ;;  %v42_v60 = vld [vmem:[%s2246_s1 + $0xd0] sm:$0xff] }
   0xe   :  { %1379 = vmatpush3.bf16.xpose.msk.msra.mxu0 %vm1652_vm1, %v1377_v27  ;;  %v1440_v55 = vpack.c.bf16 %v73_v51, %v72_v50  ;;  %v24_v56 = vld [vmem:[%s2246_s1 + $0x40] sm:$0xff]  ;;  %v25_v57 = vld [vmem:[%s2246_s1 + $0x48] sm:$0xff]  ;;  %v43_v61 = vld [vmem:[%s2246_s1 + $0xd8] sm:$0xff] }
   0xf   :  { %1427 = vmatpush3.bf16.xpose.msk.msra.mxu1 %vm1652_vm1, %v1425_v28  ;;  %1382 = vmatprep.subr.msk.bf16.mxu0 %vm1652_vm1, %v1380_v29  ;;  %v56_v58 = vld [vmem:[%s2246_s1 + $0x140] sm:$0xff]  ;;  %v57_v59 = vld [vmem:[%s2246_s1 + $0x148] sm:$0xff]  ;;  %v74_v62 = vld [vmem:[%s2246_s1 + $0x1d0] sm:$0xff]  ;;  %v1395_v0 = vpack.c.bf16 %v25_v57, %v24_v56  ;;  %v1398_v2 = vpack.c.bf16 %v43_v61, %v42_v60 }
  0x10   :  { %1430 = vmatprep.subr.msk.bf16.mxu1 %vm1652_vm1, %v1428_v30  ;;  %v75_v63 = vld [vmem:[%s2246_s1 + $0x1d8] sm:$0xff]  ;;  %v1443_v1 = vpack.c.bf16 %v57_v59, %v56_v58  ;;  %v26_v5 = vld [vmem:[%s2246_s1 + $0x50] sm:$0xff]  ;;  %v44_v9 = vld [vmem:[%s2246_s1 + $0xe0] sm:$0xff] }
  0x11   :  { %v1446_v3 = vpack.c.bf16 %v75_v63, %v74_v62  ;;  %v27_v6 = vld [vmem:[%s2246_s1 + $0x58] sm:$0xff]  ;;  %v58_v7 = vld [vmem:[%s2246_s1 + $0x150] sm:$0xff]  ;;  %v45_v10 = vld [vmem:[%s2246_s1 + $0xe8] sm:$0xff] }
  0x12   :  { %v59_v8 = vld [vmem:[%s2246_s1 + $0x158] sm:$0xff]  ;;  %v76_v11 = vld [vmem:[%s2246_s1 + $0x1e0] sm:$0xff]  ;;  %v77_v12 = vld [vmem:[%s2246_s1 + $0x1e8] sm:$0xff]  ;;  %v1401_v13 = vpack.c.bf16 %v27_v6, %v26_v5  ;;  %v1404_v15 = vpack.c.bf16 %v45_v10, %v44_v9 }
  0x13   :  { %v1449_v14 = vpack.c.bf16 %v59_v8, %v58_v7  ;;  %v1452_v16 = vpack.c.bf16 %v77_v12, %v76_v11 }
  0x16   :  { %1385 = vmatpush3.bf16.xpose.msk.msra.mxu0 %vm1652_vm1, %v1383_v39 }
  0x17   :  { %1433 = vmatpush3.bf16.xpose.msk.msra.mxu1 %vm1652_vm1, %v1431_v40  ;;  %1388 = vmatprep.subr.msk.bf16.mxu0 %vm1652_vm1, %v1386_v41 }
  0x18   :  { %1436 = vmatprep.subr.msk.bf16.mxu1 %vm1652_vm1, %v1434_v42 }
  0x1e   :  { %1391 = vmatpush3.bf16.xpose.msk.msra.mxu0 %vm1652_vm1, %v1389_v52 }
  0x1f   :  { %1439 = vmatpush3.bf16.xpose.msk.msra.mxu1 %vm1652_vm1, %v1437_v53  ;;  %1394 = vmatprep.subr.msk.bf16.mxu0 %vm1652_vm1, %v1392_v54 }
  0x20   :  { %1442 = vmatprep.subr.msk.bf16.mxu1 %vm1652_vm1, %v1440_v55 }
  0x26   :  { %1397 = vmatpush3.bf16.xpose.msk.msra.mxu0 %vm1652_vm1, %v1395_v0 }
  0x27   :  { %1445 = vmatpush3.bf16.xpose.msk.msra.mxu1 %vm1652_vm1, %v1443_v1  ;;  %1400 = vmatprep.subr.msk.bf16.mxu0 %vm1652_vm1, %v1398_v2 }
  0x28   :  { %1448 = vmatprep.subr.msk.bf16.mxu1 %vm1652_vm1, %v1446_v3 }
  0x29   :  { %8 = vsyncpa [#allocation3], 0  ;;  %v28_v17 = vld [vmem:[%s2246_s1 + $0x60] sm:$0xff]  ;;  %v29_v18 = vld [vmem:[%s2246_s1 + $0x68] sm:$0xff]  ;;  %v1618_v39 = vmov 0.0|0.0   ;;  %v1619_v55 = vmov 0.0  }
  0x2a   :  { %v60_v19 = vld [vmem:[%s2246_s1 + $0x160] sm:$0xff]  ;;  %v61_v20 = vld [vmem:[%s2246_s1 + $0x168] sm:$0xff]  ;;  %v46_v21 = vld [vmem:[%s2246_s1 + $0xf0] sm:$0xff]  ;;  %v1407_v25 = vpack.c.bf16 %v29_v18, %v28_v17  ;;  %vm828_vm2 = vcmask 850944   ;;  %s1620_s17 = smov [#allocation2]   ;;  %vm1118_vm4 = vcmask 80896  }
  0x2b   :  { %v47_v22 = vld [vmem:[%s2246_s1 + $0xf8] sm:$0xff]  ;;  %v78_v23 = vld [vmem:[%s2246_s1 + $0x1f0] sm:$0xff]  ;;  %v1455_v26 = vpack.c.bf16 %v61_v20, %v60_v19  ;;  %v96_v33 = vld [vmem:[%s2246_s1 + $0x280] sm:$0xff]  ;;  %s1126_s18 = sshll.u32 %s1620_s17, 4  ;;  %s1127_s18 = int_to_ptr.vmem [resolvable:$true] %s1126_s18 }
  0x2c   :  { %v79_v24 = vld [vmem:[%s2246_s1 + $0x1f8] sm:$0xff]  ;;  %v1410_v27 = vpack.c.bf16 %v47_v22, %v46_v21  ;;  %v30_v29 = vld [vmem:[%s2246_s1 + $0x70] sm:$0xff]  ;;  %v97_v34 = vld [vmem:[%s2246_s1 + $0x288] sm:$0xff]  ;;  %p1599_p1 = scmp.lt.s32.totalorder %s1127_s18, %s1127_s18 }
  0x2d   :  { %v1458_v28 = vpack.c.bf16 %v79_v24, %v78_v23  ;;  %v31_v30 = vld [vmem:[%s2246_s1 + $0x78] sm:$0xff]  ;;  %v62_v31 = vld [vmem:[%s2246_s1 + $0x170] sm:$0xff]  ;;  %v1464_v37 = vpack.c.bf16 %v97_v34, %v96_v33  ;;  %v112_v38 = vld [vmem:[%s2246_s1 + $0x300] sm:$0xff] }
  0x2e   :  { %1403 = vmatpush3.bf16.xpose.msk.msra.mxu0 %vm1652_vm1, %v1401_v13  ;;  %v63_v32 = vld [vmem:[%s2246_s1 + $0x178] sm:$0xff]  ;;  %v1413_v35 = vpack.c.bf16 %v31_v30, %v30_v29  ;;  %v113_v40 = vld [vmem:[%s2246_s1 + $0x308] sm:$0xff]  ;;  %v80_v41 = vld [vmem:[%s2246_s1 + $0x200] sm:$0xff] }
  0x2f   :  { %1451 = vmatpush3.bf16.xpose.msk.msra.mxu1 %vm1652_vm1, %v1449_v14  ;;  %1406 = vmatprep.subr.msk.bf16.mxu0 %vm1652_vm1, %v1404_v15  ;;  %v1461_v36 = vpack.c.bf16 %v63_v32, %v62_v31  ;;  %v81_v42 = vld [vmem:[%s2246_s1 + $0x208] sm:$0xff]  ;;  %v98_v43 = vld [vmem:[%s2246_s1 + $0x290] sm:$0xff]  ;;  %v99_v44 = vld [vmem:[%s2246_s1 + $0x298] sm:$0xff]  ;;  %v1513_v46 = vpack.c.bf16 %v113_v40, %v112_v38 }
  0x30   :  { %1454 = vmatprep.subr.msk.bf16.mxu1 %vm1652_vm1, %v1452_v16  ;;  %v1467_v47 = vpack.c.bf16 %v81_v42, %v80_v41  ;;  %v1470_v48 = vpack.c.bf16 %v99_v44, %v98_v43  ;;  %v114_v49 = vld [vmem:[%s2246_s1 + $0x310] sm:$0xff]  ;;  %v115_v50 = vld [vmem:[%s2246_s1 + $0x318] sm:$0xff]  ;;  %v100_v53 = vld [vmem:[%s2246_s1 + $0x2a0] sm:$0xff] }
  0x31   :  { %v82_v51 = vld [vmem:[%s2246_s1 + $0x210] sm:$0xff]  ;;  %v83_v52 = vld [vmem:[%s2246_s1 + $0x218] sm:$0xff]  ;;  %v101_v54 = vld [vmem:[%s2246_s1 + $0x2a8] sm:$0xff]  ;;  %v1517_v56 = vpack.c.bf16 %v115_v50, %v114_v49 }
  0x32   :  { %v1473_v57 = vpack.c.bf16 %v83_v52, %v82_v51  ;;  %v1476_v58 = vpack.c.bf16 %v101_v54, %v100_v53  ;;  %v116_v59 = vld [vmem:[%s2246_s1 + $0x320] sm:$0xff]  ;;  %v117_v60 = vld [vmem:[%s2246_s1 + $0x328] sm:$0xff]  ;;  %v102_v63 = vld [vmem:[%s2246_s1 + $0x2b0] sm:$0xff] }
  0x33   :  { %v84_v61 = vld [vmem:[%s2246_s1 + $0x220] sm:$0xff]  ;;  %v85_v62 = vld [vmem:[%s2246_s1 + $0x228] sm:$0xff]  ;;  %v103_v0 = vld [vmem:[%s2246_s1 + $0x2b8] sm:$0xff]  ;;  %v1521_v1 = vpack.c.bf16 %v117_v60, %v116_v59 }
  0x34   :  { %v1479_v2 = vpack.c.bf16 %v85_v62, %v84_v61  ;;  %v1482_v3 = vpack.c.bf16 %v103_v0, %v102_v63  ;;  %v118_v5 = vld [vmem:[%s2246_s1 + $0x330] sm:$0xff]  ;;  %v119_v6 = vld [vmem:[%s2246_s1 + $0x338] sm:$0xff]  ;;  %v104_v9 = vld [vmem:[%s2246_s1 + $0x2c0] sm:$0xff] }
  0x35   :  { %v86_v7 = vld [vmem:[%s2246_s1 + $0x230] sm:$0xff]  ;;  %v87_v8 = vld [vmem:[%s2246_s1 + $0x238] sm:$0xff]  ;;  %v105_v10 = vld [vmem:[%s2246_s1 + $0x2c8] sm:$0xff]  ;;  %v1525_v11 = vpack.c.bf16 %v119_v6, %v118_v5 }
  0x36   :  { %1409 = vmatpush3.bf16.xpose.msk.msra.mxu0 %vm1652_vm1, %v1407_v25  ;;  %v1485_v12 = vpack.c.bf16 %v87_v8, %v86_v7  ;;  %v1488_v13 = vpack.c.bf16 %v105_v10, %v104_v9  ;;  %v120_v14 = vld [vmem:[%s2246_s1 + $0x340] sm:$0xff]  ;;  %v121_v15 = vld [vmem:[%s2246_s1 + $0x348] sm:$0xff]  ;;  %v106_v18 = vld [vmem:[%s2246_s1 + $0x2d0] sm:$0xff] }
  0x37   :  { %1457 = vmatpush3.bf16.xpose.msk.msra.mxu1 %vm1652_vm1, %v1455_v26  ;;  %1412 = vmatprep.subr.msk.bf16.mxu0 %vm1652_vm1, %v1410_v27  ;;  %v88_v16 = vld [vmem:[%s2246_s1 + $0x240] sm:$0xff]  ;;  %v89_v17 = vld [vmem:[%s2246_s1 + $0x248] sm:$0xff]  ;;  %v107_v19 = vld [vmem:[%s2246_s1 + $0x2d8] sm:$0xff]  ;;  %v1529_v20 = vpack.c.bf16 %v121_v15, %v120_v14 }
  0x38   :  { %1460 = vmatprep.subr.msk.bf16.mxu1 %vm1652_vm1, %v1458_v28  ;;  %v1491_v21 = vpack.c.bf16 %v89_v17, %v88_v16  ;;  %v1494_v22 = vpack.c.bf16 %v107_v19, %v106_v18  ;;  %v122_v23 = vld [vmem:[%s2246_s1 + $0x350] sm:$0xff]  ;;  %v123_v24 = vld [vmem:[%s2246_s1 + $0x358] sm:$0xff]  ;;  %v108_v27 = vld [vmem:[%s2246_s1 + $0x2e0] sm:$0xff] }
  0x39   :  { %v90_v25 = vld [vmem:[%s2246_s1 + $0x250] sm:$0xff]  ;;  %v91_v26 = vld [vmem:[%s2246_s1 + $0x258] sm:$0xff]  ;;  %v109_v28 = vld [vmem:[%s2246_s1 + $0x2e8] sm:$0xff]  ;;  %v1533_v29 = vpack.c.bf16 %v123_v24, %v122_v23 }
  0x3a   :  { %v1497_v30 = vpack.c.bf16 %v91_v26, %v90_v25  ;;  %v1500_v31 = vpack.c.bf16 %v109_v28, %v108_v27  ;;  %v124_v32 = vld [vmem:[%s2246_s1 + $0x360] sm:$0xff]  ;;  %v125_v33 = vld [vmem:[%s2246_s1 + $0x368] sm:$0xff]  ;;  %v126_v42 = vld [vmem:[%s2246_s1 + $0x370] sm:$0xff] }
  0x3b   :  { %v92_v34 = vld [vmem:[%s2246_s1 + $0x260] sm:$0xff]  ;;  %v1537_v38 = vpack.c.bf16 %v125_v33, %v124_v32  ;;  %v127_v43 = vld [vmem:[%s2246_s1 + $0x378] sm:$0xff]  ;;  %v94_v44 = vld [vmem:[%s2246_s1 + $0x270] sm:$0xff] }
  0x3c   :  { %v1541_v49 = vpack.c.bf16 %v127_v43, %v126_v42  ;;  %v128_v52 = vld [vmem:[%s2246_s1 + $0x380] sm:$0xff]  ;;  %v129_v53 = vld [vmem:[%s2246_s1 + $0x388] sm:$0xff]  ;;  %v130_v59 = vld [vmem:[%s2246_s1 + $0x390] sm:$0xff] }
  0x3d   :  { %v812_v54 = vld [vmem:[%s2247_s2] sm:$0xff]  ;;  %v131_v60 = vld [vmem:[%s2246_s1 + $0x398] sm:$0xff]  ;;  %v133_v63 = vld [vmem:[%s2246_s1 + $0x3a8] sm:$0xff] }
  0x3e   :  { %1415 = vmatpush3.bf16.xpose.msk.msra.mxu0 %vm1652_vm1, %v1413_v35  ;;  %v93_v35 = vld [vmem:[%s2246_s1 + $0x268] sm:$0xff]  ;;  %v1549_v61 = vpack.c.bf16 %v131_v60, %v130_v59  ;;  %v132_v62 = vld [vmem:[%s2246_s1 + $0x3a0] sm:$0xff]  ;;  %v815_v5 = vld [vmem:[%s2247_s2 + $0x18] sm:$0xff] }
  0x3f   :  { %1463 = vmatpush3.bf16.xpose.msk.msra.mxu1 %vm1652_vm1, %v1461_v36  ;;  %1466 = vmatprep.subr.msk.bf16.mxu0 %vm1652_vm1, %v1464_v37  ;;  %v110_v36 = vld [vmem:[%s2246_s1 + $0x2f0] sm:$0xff]  ;;  %v111_v37 = vld [vmem:[%s2246_s1 + $0x2f8] sm:$0xff]  ;;  %v1503_v40 = vpack.c.bf16 %v93_v35, %v92_v34  ;;  %v1553_v0 = vpack.c.bf16 %v133_v63, %v132_v62  ;;  %v136_v8 = vld [vmem:[%s2246_s1 + $0x3c0] sm:$0xff] }
  0x40   :  { %1512 = vmatprep.subr.bf16.mxu1 %v1618_v39  ;;  %v1506_v41 = vpack.c.bf16 %v111_v37, %v110_v36  ;;  %v823_v6 = vld [vmem:[%s2247_s2 + $0x58] sm:$0x3]  ;;  %v137_v9 = vld [vmem:[%s2246_s1 + $0x3c8] sm:$0xff]  ;;  %v140_v14 = vld [vmem:[%s2246_s1 + $0x3e0] sm:$0xff] }
  0x41   :  { %v1572_v7 = vpack.c.bf16 %v823_v6, %v815_v5  ;;  %v1561_v10 = vpack.c.bf16 %v137_v9, %v136_v8  ;;  %v822_v4 = vld [vmem:[%s2247_s2 + $0x50] sm:$0x3]  ;;  %v825_v17 = vld [vmem:[%s2247_s2 + $0x68] sm:$0x3]  ;;  %v816_v24 = vld [vmem:[%s2247_s2 + $0x20] sm:$0xff] }
  0x42   :  { %v824_v25 = vld [vmem:[%s2247_s2 + $0x60] sm:$0x3]  ;;  %v819_v26 = vld [vmem:[%s2247_s2 + $0x38] sm:$0xff]  ;;  %vm1581_vm3 = vmpackc.low %vm828_vm2, %vm828_vm2 }
  0x43   :  { %v827_v27 = vld [vmem:[%s2247_s2 + $0x78] sm:$0x3]  ;;  %v1578_v28 = vpack.c.bf16 %v824_v25, %v816_v24  ;;  %v826_v32 = vld [vmem:[%s2247_s2 + $0x70] sm:$0x3] }
  0x45   :  { %1299 = vmatmul.mubr.msk.f32.vlgmr.msra.gmra.mrb[0].mxu0 %vm141_vm0, %v1764_v45 }
  0x46   :  { %1333 = vmatmul.mubr.msk.f32.vlgmr.msra.gmra.mrb[0].mxu1 %vm141_vm0, %v1764_v45  ;;  %1469 = vmatpush3.bf16.xpose.msk.msra.mxu0 %vm1652_vm1, %v1467_v47  ;;  %v813_v47 = vld [vmem:[%s2247_s2 + $0x8] sm:$0xff] }
  0x47   :  { %1515 = vmatpush1.bf16.xpose.msk.msra.mxu1 %vm1652_vm1, %v1513_v46  ;;  %1472 = vmatprep.subr.msk.bf16.mxu0 %vm1652_vm1, %v1470_v48  ;;  %v95_v46 = vld [vmem:[%s2246_s1 + $0x278] sm:$0xff]  ;;  %v821_v48 = vld [vmem:[%s2247_s2 + $0x48] sm:$0x3] }
  0x48   :  { %1516 = vmatprep.subr.bf16.mxu1 %v1618_v39  ;;  %1366 = vmatprep.mubr.msk.f32.mxu0 %vm141_vm0, %v1764_v45  ;;  %v1509_v50 = vpack.c.bf16 %v95_v46, %v94_v44  ;;  %v1568_v51 = vpack.c.bf16 %v821_v48, %v813_v47 }
  0x49   :  { %797 = vmatprep.mubr.f32.mxu1 %v1619_v55 }
  0x4e   :  { %1475 = vmatpush3.bf16.xpose.msk.msra.mxu0 %vm1652_vm1, %v1473_v57  ;;  %v1545_v57 = vpack.c.bf16 %v129_v53, %v128_v52 }
  0x4f   :  { %1519 = vmatpush1.bf16.xpose.msk.msra.mxu1 %vm1652_vm1, %v1517_v56  ;;  %1478 = vmatprep.subr.msk.bf16.mxu0 %vm1652_vm1, %v1476_v58  ;;  %v820_v56 = vld [vmem:[%s2247_s2 + $0x40] sm:$0x3] }
  0x50   :  { %1520 = vmatprep.subr.bf16.mxu1 %v1618_v39  ;;  %v1570_v58 = vpack.c.bf16 %v820_v56, %v812_v54 }
  0x56   :  { %1481 = vmatpush3.bf16.xpose.msk.msra.mxu0 %vm1652_vm1, %v1479_v2  ;;  %v135_v2 = vld [vmem:[%s2246_s1 + $0x3b8] sm:$0xff] }
  0x57   :  { %1523 = vmatpush1.bf16.xpose.msk.msra.mxu1 %vm1652_vm1, %v1521_v1  ;;  %1484 = vmatprep.subr.msk.bf16.mxu0 %vm1652_vm1, %v1482_v3  ;;  %v134_v1 = vld [vmem:[%s2246_s1 + $0x3b0] sm:$0xff] }
  0x58   :  { %1524 = vmatprep.subr.bf16.mxu1 %v1618_v39  ;;  %v1557_v3 = vpack.c.bf16 %v135_v2, %v134_v1 }
  0x5e   :  { %1487 = vmatpush3.bf16.xpose.msk.msra.mxu0 %vm1652_vm1, %v1485_v12  ;;  %v139_v12 = vld [vmem:[%s2246_s1 + $0x3d8] sm:$0xff] }
  0x5f   :  { %1527 = vmatpush1.bf16.xpose.msk.msra.mxu1 %vm1652_vm1, %v1525_v11  ;;  %1490 = vmatprep.subr.msk.bf16.mxu0 %vm1652_vm1, %v1488_v13  ;;  %v138_v11 = vld [vmem:[%s2246_s1 + $0x3d0] sm:$0xff] }
  0x60   :  { %1528 = vmatprep.subr.bf16.mxu1 %v1618_v39  ;;  %v1565_v13 = vpack.c.bf16 %v139_v12, %v138_v11 }
  0x66   :  { %1493 = vmatpush3.bf16.xpose.msk.msra.mxu0 %vm1652_vm1, %v1491_v21 }
  0x67   :  { %1531 = vmatpush1.bf16.xpose.msk.msra.mxu1 %vm1652_vm1, %v1529_v20  ;;  %1496 = vmatprep.subr.msk.bf16.mxu0 %vm1652_vm1, %v1494_v22 }
  0x68   :  { %1532 = vmatprep.subr.bf16.mxu1 %v1618_v39 }
  0x6e   :  { %1499 = vmatpush3.bf16.xpose.msk.msra.mxu0 %vm1652_vm1, %v1497_v30  ;;  %v1580_v30 = vpack.c.bf16 %v827_v27, %v819_v26 }
  0x6f   :  { %1535 = vmatpush1.bf16.xpose.msk.msra.mxu1 %vm1652_vm1, %v1533_v29  ;;  %1502 = vmatprep.subr.msk.bf16.mxu0 %vm1652_vm1, %v1500_v31  ;;  %v818_v31 = vld [vmem:[%s2247_s2 + $0x30] sm:$0xff] }
  0x70   :  { %1536 = vmatprep.subr.bf16.mxu1 %v1618_v39  ;;  %v1583_v37 = vpack.c.bf16 %v826_v32, %v818_v31 }
  0x76   :  { %1505 = vmatpush3.bf16.xpose.msk.msra.mxu0 %vm1652_vm1, %v1503_v40 }
  0x77   :  { %1539 = vmatpush1.bf16.xpose.msk.msra.mxu1 %vm1652_vm1, %v1537_v38  ;;  %1508 = vmatprep.subr.msk.bf16.mxu0 %vm1652_vm1, %v1506_v41 }
  0x78   :  { %1540 = vmatprep.subr.bf16.mxu1 %v1618_v39 }
  0x7e   :  { %1511 = vmatpush3.bf16.xpose.msk.msra.mxu0 %vm1652_vm1, %v1509_v50 }
  0x7f   :  { %1543 = vmatpush1.bf16.xpose.msk.msra.mxu1 %vm1652_vm1, %v1541_v49  ;;  %1569 = vmatprep.subr.bf16.mxu0 %v1568_v51 }
  0x80   :  { %1544 = vmatprep.subr.bf16.mxu1 %v1618_v39 }
  0x85   :  { %1367 = vmatmul.mubr.msk.f32.vlgmr.msra.gmra.mrb[2].mxu0 %vm141_vm0, %v1764_v45 }
  0x86   :  { %1571 = vmatpush1.bf16.xpose.msra.mxu0 %v1570_v58 }
  0x87   :  { %1547 = vmatpush1.bf16.xpose.msk.msra.mxu1 %vm1652_vm1, %v1545_v57  ;;  %1573 = vmatprep.subr.bf16.mxu0 %v1572_v7 }
  0x88   :  { %1548 = vmatprep.subr.bf16.mxu1 %v1618_v39 }
  0x8f   :  { %1551 = vmatpush1.bf16.xpose.msk.msra.mxu1 %vm1652_vm1, %v1549_v61 }
  0x90   :  { %1552 = vmatprep.subr.bf16.mxu1 %v1618_v39 }
  0x97   :  { %1555 = vmatpush1.bf16.xpose.msk.msra.mxu1 %vm1652_vm1, %v1553_v0 }
  0x98   :  { %1556 = vmatprep.subr.bf16.mxu1 %v1618_v39 }
  0x9f   :  { %1559 = vmatpush1.bf16.xpose.msk.msra.mxu1 %vm1652_vm1, %v1557_v3 }
  0xa0   :  { %1560 = vmatprep.subr.bf16.mxu1 %v1618_v39 }
  0xa7   :  { %1563 = vmatpush1.bf16.xpose.msk.msra.mxu1 %vm1652_vm1, %v1561_v10 }
  0xa8   :  { %1564 = vmatprep.subr.bf16.mxu1 %v1618_v39  ;;  %v814_v39 = vld [vmem:[%s2247_s2 + $0x10] sm:$0xff] }
  0xa9   :  { %v1574_v21 = vpack.c.bf16 %v822_v4, %v814_v39 }
  0xaf   :  { %1567 = vmatpush1.bf16.xpose.msk.msra.mxu1 %vm1652_vm1, %v1565_v13 }
  0xb0   :  { %789 = vmatprep.subr.mxu1 %v1619_v55  ;;  %v817_v55 = vld [vmem:[%s2247_s2 + $0x28] sm:$0xff]  ;;  %s1594_s2 = scalar_lea.vmem %s1127_s18, 128 }
  0xb1   :  { %v1576_v22 = vpack.c.bf16 %v825_v17, %v817_v55  ;;  %p1595_p0 = scmp.ne.s32.totalorder %s1127_s18, %s1594_s2  ;;  %p1600_p2 = scmp.lt.s32.totalorder %s1594_s2, %s1594_s2 }
  0xb3   :  { %p1601_p3 = por %p1600_p2, %p1599_p1 }
  0xb5   :  { %p1602_p4 = pnand %p1601_p3, %p1595_p0 }
  0xb7   :  { %1261 = vmatpush1.xpose.msk.msra.mxu1 %vm141_vm0, %v140_v14 }
  0xba   :  { %1262 = vmatmul.mubr.msk.f32.vlgmr.msra.gmra.mrb[2].mxu1 %vm141_vm0, %v1764_v45 }
 0x118   :  { %v586_v15 = vpop.f32.mrb[0].mxu0 }
 0x119   :  { %v657_v16 = vpop.f32.mrb[0].mxu1  ;;  %v804_v18 = vmax.f32 %v586_v15, 0.0  ;;  %v588_v45 = vpop.f32.mrb[1].mxu0 }
 0x11a   :  { %v659_v19 = vpop.f32.mrb[1].mxu1  ;;  %v805_v20 = vmax.f32 %v588_v45, 0.0  ;;  %v806_v29 = vmax.f32 %v657_v16, 0.0 }
 0x11b   :  { %v807_v23 = vmax.f32 %v659_v19, 0.0 }
 0x11c   :  { %902 = vmatprep.mubr.f32.mxu0 %v805_v20 }
 0x11d   :  { %903 = vmatmul.mubr.f32.vlgmr.msra.gmra.mrb[4].mxu0 %v804_v18 }
 0x11e   :  { %1575 = vmatpush1.bf16.xpose.msra.mxu0 %v1574_v21  ;;  %972 = vmatprep.mubr.f32.mxu0 %v807_v23 }
 0x11f   :  { %1577 = vmatprep.subr.bf16.mxu0 %v1576_v22 }
 0x125   :  { %973 = vmatmul.mubr.f32.vlgmr.msra.gmra.mrb[4].mxu0 %v806_v29 }
 0x126   :  { %1579 = vmatpush1.bf16.xpose.msra.mxu0 %v1578_v28 }
 0x127   :  { %1582 = vmatprep.subr.msk.bf16.mxu0 %vm1581_vm3, %v1580_v30 }
 0x158   :  { %v728_v33 = vpop.f32.mrb[2].mxu0 }
 0x159   :  { %v808_v34 = vmax.f32 %v728_v33, 0.0  ;;  %v730_v35 = vpop.f32.mrb[3].mxu0 }
 0x15a   :  { %v809_v36 = vmax.f32 %v730_v35, 0.0 }
 0x15c   :  { %1042 = vmatprep.mubr.f32.mxu0 %v809_v36 }
 0x15d   :  { %1043 = vmatmul.mubr.f32.vlgmr.msra.gmra.mrb[4].mxu0 %v808_v34 }
 0x15e   :  { %1584 = vmatpush1.bf16.xpose.msra.mxu0 %v1583_v37 }
 0x18d   :  { %v799_v38 = vpop.f32.mrb[2].mxu1 }
 0x18e   :  { %v801_v40 = vpop.f32.mrb[3].mxu1  ;;  %v810_v42 = vmax.f32 %v799_v38, 0.0 }
 0x18f   :  { %v811_v41 = vmax.f32 %v801_v40, 0.0 }
 0x191   :  { %1265 = vmatprep.mubr.msk.f32.mxu0 %vm828_vm2, %v811_v41 }
 0x192   :  { %1113 = vmatmul.mubr.f32.vlgmr.msra.gmra.mrb[4].mxu0 %v810_v42 }
 0x265   :  { %v1114_v43 = vpop.f32.mrb[4].mxu0 }
 0x266   :  { %1119 = vst.msk [vmem:[#allocation2] sm:$0xff] %vm1118_vm4, %v1114_v43  ;;  %v1116_v44 = vpop.f32.mrb[5].mxu0 }
 0x267   :  { %1605 = shalt.err (!%p1602_p4)
}
 0x268   :  { %s1606_s21 = scalar_lea.hbm %s2248_s3, 128 }
 0x269   :  { %p1607_p5 = scmp.ne.s32.totalorder %s2248_s3, %s1606_s21  ;;  %p1610_p6 = scmp.lt.u32.totalorder %s1606_s21, %s2248_s3 }
 0x26b   :  { %p1612_p7 = pnand %p1610_p6, %p1607_p5 }
 0x26d   :  { %1615 = shalt.err (!%p1612_p7)
}
 0x26e   :  { %1129 = dma.vmem_to_hbm [thread:$0]  %s1127_s18, 128, %s2248_s3, [#allocation3]  }
 0x26f   :  { %1616 = dma.done.wait [#allocation3], 128  }
 0x270   :  { %1617 = vsyncadd [#allocation3], 4294967168 }
 0x271   :  { %1133 = vsyncpa [#allocation3], 1 }

</bundles_post_ra>
